<compile_context>
chip_gen: v6e
topology: v6e:2x2x1
jax: 0.10.0
libtpu: 0.0.40
codegen_flags: <defaults>
</compile_context>

<pallas_src>
import functools

import jax
import jax.numpy as jnp
from jax import lax
from jax.experimental import pallas as pl
from jax.experimental.pallas import tpu as pltpu


def _infonce_kernel(q_ref, k_ref, kd_ref, w_ref, b_ref, out_ref,
                    qp_ref, diag_ref, m_ref, l_ref, *, exp_dtype):
    """One (q-tile, key-tile) grid step of the online-softmax cross entropy.

    q_ref   : [tq, Dq]  query rows for this q tile (native dtype)
    k_ref   : [tk, Dk]  key rows for this reduction step (native dtype)
    kd_ref  : [tq, Dk]  key rows aligned with the q tile (diagonal term)
    w_ref   : [Dq, Dk]  projection weight (1/T pre-folded), b_ref: [1, Dk]
    out_ref : [tq, 1]   per-row loss (written on the last reduction step)
    qp_ref  : [tq, Dk]  scratch, MXU dtype — cached scaled projection
    diag_ref, m_ref, l_ref : [tq, 1] f32 scratch — diag / running max / exp-sum
    """
    k_idx = pl.program_id(1)
    nk = pl.num_programs(1)

    @pl.when(k_idx == 0)
    def _init():
        # nn.Linear on native input dtype, f32 MXU accumulation.  1/T is
        # already folded into W and b on the host.
        qp_f32 = jnp.dot(q_ref[...], w_ref[...],
                         preferred_element_type=jnp.float32)
        qp_f32 = qp_f32 + b_ref[...].astype(jnp.float32)
        # Diagonal (label) term <q_proj_i, keys_i>: once per q tile, from the
        # full-precision projection.  O(tq*Dk).
        diag_ref[...] = jnp.sum(qp_f32 * kd_ref[...].astype(jnp.float32),
                                axis=-1, keepdims=True)
        # Cache the projection in the MXU input dtype (bf16 stays bf16).
        qp_ref[...] = qp_f32.astype(qp_ref.dtype)
        m_ref[...] = jnp.full(m_ref.shape, -jnp.inf, dtype=jnp.float32)
        l_ref[...] = jnp.zeros(l_ref.shape, dtype=jnp.float32)

    # logits tile = qp @ keys.T without materializing keys.T; operands stay in
    # their native dtype, accumulation in f32.
    k_tile = k_ref[...]
    if k_tile.dtype != qp_ref.dtype:              # trace-time branch only
        k_tile = k_tile.astype(qp_ref.dtype)
    s = lax.dot_general(
        qp_ref[...], k_tile,
        dimension_numbers=(((1,), (1,)), ((), ())),
        preferred_element_type=jnp.float32)       # [tq, tk] f32

    # Online logsumexp update.
    m_prev = m_ref[...]
    m_new = jnp.maximum(m_prev, jnp.max(s, axis=-1, keepdims=True))
    alpha = jnp.exp(m_prev - m_new)
    p = jnp.exp((s - m_new).astype(exp_dtype)).astype(jnp.float32)
    l_ref[...] = alpha * l_ref[...] + jnp.sum(p, axis=-1, keepdims=True)
    m_ref[...] = m_new

    @pl.when(k_idx == nk - 1)
    def _finalize():
        lse = m_ref[...] + jnp.log(l_ref[...])    # [tq, 1]
        out_ref[...] = lse - diag_ref[...]


def _pick_tile(b, target, align=128):
    """Largest divisor of b <= target that is a multiple of `align` (then of
    8), falling back to the full dimension."""
    target = max(1, min(int(target), int(b)))
    best = None
    for cand in range(target, 0, -1):
        if b % cand:
            continue
        if cand % align == 0:
            return cand
        if best is None and cand % 8 == 0:
            best = cand
    return best if best is not None else b


def _select_tiles(B, Dq, Dk, q_itemsize, k_itemsize, budget_bytes):
    """Generation-friendly default tiles under an explicit VMEM budget."""
    # q tile: large enough that the re-streamed keys stay compute-bound, but
    # keep nq >= 2 when possible so v7x's 2 TensorCores both get work.
    if B >= 1024:
        tq_target = 512
    elif B >= 16:
        tq_target = max(8, B // 2)
    else:
        tq_target = B
    tq = _pick_tile(B, tq_target)

    # key tile: as large as the VMEM budget allows — amortizes the ~0.35us
    # per-grid-step overhead.  Dominant terms: double-buffered keys and the
    # f32 logits tile + its exp temporary.
    tk_target = min(B, 4096)
    while True:
        tk = _pick_tile(B, tk_target)
        est = (2 * tk * Dk * k_itemsize           # keys (double buffered)
               + 2 * tq * Dk * k_itemsize         # diag-aligned keys
               + 2 * tq * Dq * q_itemsize         # queries
               + 2 * Dq * Dk * 4                  # W (f32 upper bound)
               + tq * Dk * (4 + k_itemsize)       # f32 proj temp + qp scratch
               + 2 * tq * tk * 4                  # logits tile + exp temp
               + 8 * tq * 4)                      # m/l/diag + output
        if est <= budget_bytes or tk_target <= 256 or tk <= 256:
            return tq, tk
        tk_target //= 2


def infonce_loss(queries, keys, w, b, *, temperature=0.1, tq=None, tk=None,
                 exp_dtype=jnp.float32, vmem_limit_bytes=48 * 1024 * 1024):
    B, Dq = queries.shape
    Bk, Dk = keys.shape
    assert B == Bk, "queries and keys must share the batch dimension"

    # Fold 1/T into the projection parameters on the host: the kernel never
    # rescales the (tq, Dk) projection or the (tq, tk) logits tile.
    inv_t = 1.0 / float(temperature)
    w_scaled = (w.astype(jnp.float32) * inv_t).astype(w.dtype)
    b_scaled = (b.astype(jnp.float32) * inv_t).reshape(1, Dk)

    # MXU operand dtype for the big logits matmul (bf16 stays bf16).
    mxu_dtype = jnp.promote_types(queries.dtype, keys.dtype)

    if tq is None or tk is None:
        atq, atk = _select_tiles(B, Dq, Dk, queries.dtype.itemsize,
                                 keys.dtype.itemsize,
                                 budget_bytes=int(0.8 * vmem_limit_bytes))
        tq = atq if tq is None else tq
        tk = atk if tk is None else tk
    assert B % tq == 0 and B % tk == 0, "tile sizes must divide the batch"
    nq, nk = B // tq, B // tk

    kernel = functools.partial(_infonce_kernel, exp_dtype=exp_dtype)

    cost = pl.CostEstimate(
        flops=2 * B * Dq * Dk + 2 * B * B * Dk + 2 * B * Dk,
        transcendentals=B * B + B * (nk + 1),      # softmax exps, alpha, log
        bytes_accessed=(B * Dq * queries.dtype.itemsize            # queries
                        + (nq + 1) * B * Dk * keys.dtype.itemsize  # keys(+diag)
                        + Dq * Dk * w.dtype.itemsize
                        + Dk * 4
                        + B * 4),                                  # per-row out
    )

    per_row = pl.pallas_call(
        kernel,
        out_shape=jax.ShapeDtypeStruct((B, 1), jnp.float32),
        grid_spec=pltpu.PrefetchScalarGridSpec(
            num_scalar_prefetch=0,
            grid=(nq, nk),
            in_specs=[
                pl.BlockSpec((tq, Dq), lambda i, k: (i, 0)),  # queries (q tile)
                pl.BlockSpec((tk, Dk), lambda i, k: (k, 0)),  # keys (reduction)
                pl.BlockSpec((tq, Dk), lambda i, k: (i, 0)),  # keys @ q rows
                pl.BlockSpec((Dq, Dk), lambda i, k: (0, 0)),  # W (resident)
                pl.BlockSpec((1, Dk), lambda i, k: (0, 0)),   # bias (resident)
            ],
            out_specs=pl.BlockSpec((tq, 1), lambda i, k: (i, 0)),
            scratch_shapes=[
                pltpu.VMEM((tq, Dk), mxu_dtype),   # cached scaled projection
                pltpu.VMEM((tq, 1), jnp.float32),  # diagonal (label) term
                pltpu.VMEM((tq, 1), jnp.float32),  # running max
                pltpu.VMEM((tq, 1), jnp.float32),  # running exp-sum
            ],
        ),
        compiler_params=pltpu.CompilerParams(
            dimension_semantics=("parallel", "arbitrary"),
            vmem_limit_bytes=int(vmem_limit_bytes)),
        cost_estimate=cost,
    )(queries, keys, keys, w_scaled, b_scaled)

    # Tiny final mean over B done outside the kernel (keeps q axis parallel).
    return jnp.mean(per_row[:, 0])


def infonce_loss_ref(queries, keys, w, b, *, temperature=0.1):
    """Plain-JAX reference mirroring the PyTorch module."""
    q_proj = queries @ w + b
    logits = (q_proj @ keys.T) / temperature
    labels = jnp.arange(logits.shape[0])
    lse = jax.scipy.special.logsumexp(logits, axis=-1)
    correct = logits[jnp.arange(logits.shape[0]), labels]
    return jnp.mean(lse - correct)


if __name__ == "__main__":
    # Small shapes: batch=8, query_dim=32, key_dim=16 (query_dim != key_dim so
    # the Linear projection path is exercised, same as the torch module).
    B, Dq, Dk = 8, 32, 16
    temperature = 0.1

    key = jax.random.PRNGKey(0)
    kq, kk, kw, kb = jax.random.split(key, 4)

    queries = jax.random.normal(kq, (B, Dq), dtype=jnp.float32)
    keys = jax.random.normal(kk, (B, Dk), dtype=jnp.float32)

    # Deterministic nn.Linear(Dq, Dk)-style init: U(-1/sqrt(Dq), 1/sqrt(Dq)).
    bound = 1.0 / jnp.sqrt(jnp.float32(Dq))
    w = jax.random.uniform(kw, (Dq, Dk), jnp.float32, -bound, bound)
    b = jax.random.uniform(kb, (Dk,), jnp.float32, -bound, bound)

    loss = jax.block_until_ready(
        infonce_loss(queries, keys, w, b, temperature=temperature)
    )
    loss_ref = infonce_loss_ref(queries, keys, w, b, temperature=temperature)

    assert jnp.isfinite(loss)
    assert jnp.allclose(loss, loss_ref, rtol=1e-5, atol=1e-5), (loss, loss_ref)
    print("KERNEL_OK")
</pallas_src>

<mosaic_0001>
module attributes {stable_mosaic.version = 11 : i64} {
  func.func @_infonce_kernel(%arg0: i32, %arg1: i32, %arg2: memref<8x32xf32, #tpu.memory_space<vmem>>, %arg3: memref<8x16xf32, #tpu.memory_space<vmem>>, %arg4: memref<8x16xf32, #tpu.memory_space<vmem>>, %arg5: memref<32x16xf32, #tpu.memory_space<vmem>>, %arg6: memref<1x16xf32, #tpu.memory_space<vmem>>, %arg7: memref<8x1xf32, #tpu.memory_space<vmem>>, %arg8: memref<8x16xf32, #tpu.memory_space<vmem>>, %arg9: memref<8x1xf32, #tpu.memory_space<vmem>>, %arg10: memref<8x1xf32, #tpu.memory_space<vmem>>, %arg11: memref<8x1xf32, #tpu.memory_space<vmem>>) attributes {dimension_semantics = [#tpu.dimension_semantics<parallel>, #tpu.dimension_semantics<arbitrary>], iteration_bounds = array<i64: 1, 1>, scalar_prefetch = 0 : i64, scratch_operands = 4 : i64, tpu.core_type = #tpu.core_type<tc>, window_params = [{transform_indices = @transform_0, window_bounds = array<i64: 8, 32>}, {transform_indices = @transform_1, window_bounds = array<i64: 8, 16>}, {transform_indices = @transform_2, window_bounds = array<i64: 8, 16>}, {pipeline_mode = #tpu.pipeline_mode<synchronous>, transform_indices = @transform_3, window_bounds = array<i64: 32, 16>}, {pipeline_mode = #tpu.pipeline_mode<synchronous>, transform_indices = @transform_4, window_bounds = array<i64: 1, 16>}, {transform_indices = @transform_5, window_bounds = array<i64: 8, 1>}]} {
    %c0_i32 = arith.constant 0 : i32
    %0 = arith.cmpi eq, %arg1, %c0_i32 : i32
    %1 = arith.extui %0 : i1 to i32
    %c0_i32_0 = arith.constant 0 : i32
    %2 = arith.cmpi ne, %1, %c0_i32_0 : i32
    scf.if %2 {
      %c0_16 = arith.constant 0 : index
      %c0_17 = arith.constant 0 : index
      %25 = vector.load %arg2[%c0_16, %c0_17] : memref<8x32xf32, #tpu.memory_space<vmem>>, vector<8x32xf32>
      %c0_18 = arith.constant 0 : index
      %c0_19 = arith.constant 0 : index
      %26 = vector.load %arg5[%c0_18, %c0_19] : memref<32x16xf32, #tpu.memory_space<vmem>>, vector<32x16xf32>
      %cst_20 = arith.constant dense<0.000000e+00> : vector<8x16xf32>
      %27 = tpu.matmul %25, %26, %cst_20 {dimension_numbers = #tpu.dot_dimension_numbers<[1], [0], [0], [1], [0, 0, 1, 1], [], []>} : vector<8x32xf32>, vector<32x16xf32>, vector<8x16xf32> -> vector<8x16xf32>
      %c0_21 = arith.constant 0 : index
      %c0_22 = arith.constant 0 : index
      %28 = vector.load %arg6[%c0_21, %c0_22] : memref<1x16xf32, #tpu.memory_space<vmem>>, vector<1x16xf32>
      %29 = vector.broadcast %28 : vector<1x16xf32> to vector<8x16xf32>
      %30 = arith.addf %27, %29 : vector<8x16xf32>
      %c0_23 = arith.constant 0 : index
      %c0_24 = arith.constant 0 : index
      %31 = vector.load %arg4[%c0_23, %c0_24] : memref<8x16xf32, #tpu.memory_space<vmem>>, vector<8x16xf32>
      %32 = arith.mulf %30, %31 : vector<8x16xf32>
      %cst_25 = arith.constant dense<0.000000e+00> : vector<8xf32>
      %33 = vector.multi_reduction <add>, %32, %cst_25 [1] : vector<8x16xf32> to vector<8xf32>
      %34 = vector.shape_cast %33 : vector<8xf32> to vector<8x1xf32>
      %c0_26 = arith.constant 0 : index
      %c0_27 = arith.constant 0 : index
      %35 = vector.load %arg9[%c0_26, %c0_27] : memref<8x1xf32, #tpu.memory_space<vmem>>, vector<8x1xf32>
      tpu.vector_store %arg9[%c0_26, %c0_27], %34 {strides = array<i32>} : memref<8x1xf32, #tpu.memory_space<vmem>>, vector<8x1xf32>,
      %c0_28 = arith.constant 0 : index
      %c0_29 = arith.constant 0 : index
      %36 = vector.load %arg8[%c0_28, %c0_29] : memref<8x16xf32, #tpu.memory_space<vmem>>, vector<8x16xf32>
      tpu.vector_store %arg8[%c0_28, %c0_29], %30 {strides = array<i32>} : memref<8x16xf32, #tpu.memory_space<vmem>>, vector<8x16xf32>,
      %cst_30 = arith.constant 0xFF800000 : f32
      %37 = vector.broadcast %cst_30 : f32 to vector<8x1xf32>
      %c0_31 = arith.constant 0 : index
      %c0_32 = arith.constant 0 : index
      %38 = vector.load %arg10[%c0_31, %c0_32] : memref<8x1xf32, #tpu.memory_space<vmem>>, vector<8x1xf32>
      tpu.vector_store %arg10[%c0_31, %c0_32], %37 {strides = array<i32>} : memref<8x1xf32, #tpu.memory_space<vmem>>, vector<8x1xf32>,
      %cst_33 = arith.constant 0.000000e+00 : f32
      %39 = vector.broadcast %cst_33 : f32 to vector<8x1xf32>
      %c0_34 = arith.constant 0 : index
      %c0_35 = arith.constant 0 : index
      %40 = vector.load %arg11[%c0_34, %c0_35] : memref<8x1xf32, #tpu.memory_space<vmem>>, vector<8x1xf32>
      tpu.vector_store %arg11[%c0_34, %c0_35], %39 {strides = array<i32>} : memref<8x1xf32, #tpu.memory_space<vmem>>, vector<8x1xf32>,
    } else {
    }
    %c0 = arith.constant 0 : index
    %c0_1 = arith.constant 0 : index
    %3 = vector.load %arg3[%c0, %c0_1] : memref<8x16xf32, #tpu.memory_space<vmem>>, vector<8x16xf32>
    %c0_2 = arith.constant 0 : index
    %c0_3 = arith.constant 0 : index
    %4 = vector.load %arg8[%c0_2, %c0_3] : memref<8x16xf32, #tpu.memory_space<vmem>>, vector<8x16xf32>
    %cst = arith.constant dense<0.000000e+00> : vector<8x8xf32>
    %5 = tpu.matmul %4, %3, %cst {dimension_numbers = #tpu.dot_dimension_numbers<[1], [1], [0], [0], [0, 0, 1, 0], [], []>} : vector<8x16xf32>, vector<8x16xf32>, vector<8x8xf32> -> vector<8x8xf32>
    %c0_4 = arith.constant 0 : index
    %c0_5 = arith.constant 0 : index
    %6 = vector.load %arg10[%c0_4, %c0_5] : memref<8x1xf32, #tpu.memory_space<vmem>>, vector<8x1xf32>
    %cst_6 = arith.constant dense<0xFF800000> : vector<8xf32>
    %7 = vector.multi_reduction <maximumf>, %5, %cst_6 [1] : vector<8x8xf32> to vector<8xf32>
    %8 = vector.shape_cast %7 : vector<8xf32> to vector<8x1xf32>
    %9 = arith.maximumf %6, %8 : vector<8x1xf32>
    %10 = arith.subf %6, %9 : vector<8x1xf32>
    %11 = math.exp %10 : vector<8x1xf32>
    %12 = vector.broadcast %9 : vector<8x1xf32> to vector<8x8xf32>
    %13 = arith.subf %5, %12 : vector<8x8xf32>
    %14 = math.exp %13 : vector<8x8xf32>
    %c0_7 = arith.constant 0 : index
    %c0_8 = arith.constant 0 : index
    %15 = vector.load %arg11[%c0_7, %c0_8] : memref<8x1xf32, #tpu.memory_space<vmem>>, vector<8x1xf32>
    %16 = arith.mulf %11, %15 : vector<8x1xf32>
    %cst_9 = arith.constant dense<0.000000e+00> : vector<8xf32>
    %17 = vector.multi_reduction <add>, %14, %cst_9 [1] : vector<8x8xf32> to vector<8xf32>
    %18 = vector.shape_cast %17 : vector<8xf32> to vector<8x1xf32>
    %19 = arith.addf %16, %18 : vector<8x1xf32>
    %c0_10 = arith.constant 0 : index
    %c0_11 = arith.constant 0 : index
    %20 = vector.load %arg11[%c0_10, %c0_11] : memref<8x1xf32, #tpu.memory_space<vmem>>, vector<8x1xf32>
    tpu.vector_store %arg11[%c0_10, %c0_11], %19 {strides = array<i32>} : memref<8x1xf32, #tpu.memory_space<vmem>>, vector<8x1xf32>,
    %c0_12 = arith.constant 0 : index
    %c0_13 = arith.constant 0 : index
    %21 = vector.load %arg10[%c0_12, %c0_13] : memref<8x1xf32, #tpu.memory_space<vmem>>, vector<8x1xf32>
    tpu.vector_store %arg10[%c0_12, %c0_13], %9 {strides = array<i32>} : memref<8x1xf32, #tpu.memory_space<vmem>>, vector<8x1xf32>,
    %c0_i32_14 = arith.constant 0 : i32
    %22 = arith.cmpi eq, %arg1, %c0_i32_14 : i32
    %23 = arith.extui %22 : i1 to i32
    %c0_i32_15 = arith.constant 0 : i32
    %24 = arith.cmpi ne, %23, %c0_i32_15 : i32
    scf.if %24 {
      %c0_16 = arith.constant 0 : index
      %c0_17 = arith.constant 0 : index
      %25 = vector.load %arg10[%c0_16, %c0_17] : memref<8x1xf32, #tpu.memory_space<vmem>>, vector<8x1xf32>
      %c0_18 = arith.constant 0 : index
      %c0_19 = arith.constant 0 : index
      %26 = vector.load %arg11[%c0_18, %c0_19] : memref<8x1xf32, #tpu.memory_space<vmem>>, vector<8x1xf32>
      %27 = math.log %26 : vector<8x1xf32>
      %28 = arith.addf %25, %27 : vector<8x1xf32>
      %c0_20 = arith.constant 0 : index
      %c0_21 = arith.constant 0 : index
      %29 = vector.load %arg9[%c0_20, %c0_21] : memref<8x1xf32, #tpu.memory_space<vmem>>, vector<8x1xf32>
      %30 = arith.subf %28, %29 : vector<8x1xf32>
      %c0_22 = arith.constant 0 : index
      %c0_23 = arith.constant 0 : index
      %31 = vector.load %arg7[%c0_22, %c0_23] : memref<8x1xf32, #tpu.memory_space<vmem>>, vector<8x1xf32>
      tpu.vector_store %arg7[%c0_22, %c0_23], %30 {strides = array<i32>} : memref<8x1xf32, #tpu.memory_space<vmem>>, vector<8x1xf32>,
    } else {
    }
    return
  }
  func.func @transform_0(%arg0: i32, %arg1: i32) -> (i32, i32) {
    %c0_i32 = arith.constant 0 : i32
    %c0_i32_0 = arith.constant 0 : i32
    return %arg0, %c0_i32 : i32, i32
  }
  func.func @transform_1(%arg0: i32, %arg1: i32) -> (i32, i32) {
    %c0_i32 = arith.constant 0 : i32
    %c0_i32_0 = arith.constant 0 : i32
    return %arg1, %c0_i32 : i32, i32
  }
  func.func @transform_2(%arg0: i32, %arg1: i32) -> (i32, i32) {
    %c0_i32 = arith.constant 0 : i32
    %c0_i32_0 = arith.constant 0 : i32
    return %arg0, %c0_i32 : i32, i32
  }
  func.func @transform_3(%arg0: i32, %arg1: i32) -> (i32, i32) {
    %c0_i32 = arith.constant 0 : i32
    %c0_i32_0 = arith.constant 0 : i32
    %c0_i32_1 = arith.constant 0 : i32
    return %c0_i32, %c0_i32_0 : i32, i32
  }
  func.func @transform_4(%arg0: i32, %arg1: i32) -> (i32, i32) {
    %c0_i32 = arith.constant 0 : i32
    %c0_i32_0 = arith.constant 0 : i32
    %c0_i32_1 = arith.constant 0 : i32
    return %c0_i32, %c0_i32_0 : i32, i32
  }
  func.func @transform_5(%arg0: i32, %arg1: i32) -> (i32, i32) {
    %c0_i32 = arith.constant 0 : i32
    %c0_i32_0 = arith.constant 0 : i32
    return %arg0, %c0_i32 : i32, i32
  }
}

</mosaic_0001>

<bundles_post_ra>
// kernel: tpu_custom_call.1
= control target key start
LH: loop header
LB: loop body
LE: loop exit
PB: predicated region body
PF: predicated region fallthrough
CT: control target
= control target key end

     0   :  { %v279_v0 = vmov 0.0   ;;  %vm280_vm0 = vmmov 0   ;;  %vm36_vm1 = vcmask 261120   ;;  %vm112_vm2 = vcmask 130048   ;;  %s352_s3 = inlined_call_operand.vmem [shape: f32[32,16], index: 3, kind: input, shape index: {}]   ;;  %s353_s0 = inlined_call_operand.vmem [shape: f32[8,32], index: 0, kind: input, shape index: {}]   ;;  %s354_s1 = inlined_call_operand.vmem [shape: f32[8,16], index: 1, kind: input, shape index: {}]   ;;  %s355_s4 = inlined_call_operand.vmem [shape: f32[1,16], index: 4, kind: input, shape index: {}]   ;;  %s356_s2 = inlined_call_operand.vmem [shape: f32[8,16], index: 2, kind: input, shape index: {}]   ;;  %s357_s5 = inlined_call_operand.vmem [shape: f32[8,1], index: 5, kind: output, shape index: {}]  }
   0x1   :  { %252 = vmatprep.subr.mxu0 %v279_v0  ;;  %v28_v1 = vld [vmem:[%s352_s3 + $0x18] sm:$0xff]  ;;  %v27_v2 = vld [vmem:[%s352_s3 + $0x10] sm:$0xff]  ;;  %260 = vmatprep.mubr.msk.f32.mxu0 %vm280_vm0, %v279_v0  ;;  %v26_v3 = vld [vmem:[%s352_s3 + $0x8] sm:$0xff]  ;;  %vm116_vm3 = vcmask 7168   ;;  %v281_v12 = vmov -inf   ;;  %vm201_vm4 = vcmask 64512  }
   0x2   :  { %253 = vmatpush3.msra.mxu0 %v28_v1  ;;  %263 = vmatprep.subr.mxu1 %v279_v0  ;;  %v25_v4 = vld [vmem:[%s352_s3] sm:$0xff]  ;;  %119 = vst.msk [vmem:[#allocation4] sm:$0xff] %vm116_vm3, %v281_v12  ;;  %120 = vst.msk [vmem:[#allocation5] sm:$0xff] %vm116_vm3, %v279_v0  ;;  %v282_v16 = vmov 0  }
   0x3   :  { %254 = vmatprep.subr.mxu0 %v279_v0  ;;  %265 = vmatprep.mubr.msk.f32.mxu1 %vm280_vm0, %v279_v0  ;;  %v24_v5 = vld [vmem:[%s353_s0] sm:$0xff] }
   0x4   :  { %255 = vmatpush3.msra.mxu0 %v27_v2  ;;  %v121_v6 = vld [vmem:[%s354_s1] sm:$0xff]  ;;  %272 = vset.pattern.permute.xlu0 %v282_v16 }
   0x5   :  { %256 = vmatprep.subr.mxu0 %v279_v0  ;;  %264 = vmatpush3.xpose.msk.msra.mxu1 %vm112_vm2, %v121_v6  ;;  %v241_v7 = vld [vmem:[%s355_s4] ss:$0 sm:$0xff] }
   0x6   :  { %257 = vmatpush3.msra.mxu0 %v26_v3  ;;  %v110_v24 = vld [vmem:[%s356_s2] sm:$0xff] }
   0x7   :  { %258 = vmatprep.subr.mxu0 %v279_v0 }
   0x8   :  { %259 = vmatpush3.msra.mxu0 %v25_v4 }
   0x9   :  { %261 = vmatmul.mubr.msk.f32.vlgmr.msra.gmra.mxu0 %vm36_vm1, %v24_v5  ;;  %v200_v17 = vld [vmem:[#allocation4] sm:$0xff]  ;;  %v217_v31 = vld [vmem:[#allocation5] sm:$0xff] }
  0xc9   :  { %v106_v8 = vpop.f32.mrf.mxu0 }
  0xca   :  { %v107_v9 = vadd.f32 %v241_v7, %v106_v8 }
  0xcb   :  { %v262_v10 = vpop.f32.mrf.mxu0 }
  0xcc   :  { %118 = vst.msk [vmem:[#allocation2] sm:$0xff] %vm112_vm2, %v107_v9  ;;  %v111_v27 = vmul.f32 %v110_v24, %v107_v9 }
  0xce   :  { %v113_v28 = vsel %vm112_vm2, %v111_v27, 0.0 }
  0xd3   :  { %v122_v11 = vld [vmem:[#allocation2] sm:$0xff] }
  0xd4   :  { %266 = vmatmul.mubr.msk.f32.vlgmr.msra.gmra.mxu1 %vm112_vm2, %v122_v11 }
 0x194   :  { %v196_v13 = vpop.f32.mrf.mxu1 }
 0x195   :  { %v202_v14 = vsel %vm201_vm4, %v196_v13, -inf }
 0x196   :  { %203 = vmax.xlane.f32.xlu0 %v202_v14  ;;  %v267_v15 = vpop.f32.mrf.mxu1 }
 0x21f   :  { %v204_v18 = vpop.xlane.xlu0 %203 }
 0x220   :  { %v205_v19 = vmax.f32 %v200_v17, %v204_v18 }
 0x222   :  { %v206_v20 = vsub.f32 %v200_v17, %v205_v19  ;;  %225 = vst.msk [vmem:[#allocation4] sm:$0xff] %vm116_vm3, %v205_v19  ;;  %211 = vperm.xlu0 %272, %v205_v19  }
 0x224   :  { %v207_v29 = vmul.f32 1.442695, %v206_v20 }
 0x229   :  { %v229_v39 = vld [vmem:[#allocation4] sm:$0xff] }
 0x29d   :  { %v212_v21 = vpop.permute.xlu0 %211 }
 0x29e   :  { %v214_v22 = vsub.f32 %v196_v13, %v212_v21 }
 0x2a0   :  { %v215_v23 = vmul.f32 1.442695, %v214_v22 }
 0x2a2   :  { %273 = vpow2.f32 %v215_v23 }
 0x2a3   :  { %275 = vpow2.f32 %v207_v29 }
 0x2af   :  { %v274_v25 = vpop.eup %273 }
 0x2b0   :  { %v219_v26 = vsel %vm201_vm4, %v274_v25, 0.0  ;;  %v276_v30 = vpop.eup %275 }
 0x2b1   :  { %220 = vadd.xlane.f32.xlu1 %v219_v26  ;;  %v218_v32 = vmul.f32 %v276_v30, %v217_v31 }
 0x2b5   :  { %114 = vadd.xlane.f32.xlu1 %v113_v28 }
 0x33a   :  { %v221_v33 = vpop.xlane.xlu1 %220 }
 0x33b   :  { %v222_v34 = vadd.f32 %v221_v33, %v218_v32 }
 0x33d   :  { %224 = vst.msk [vmem:[#allocation5] sm:$0xff] %vm116_vm3, %v222_v34 }
 0x33e   :  { %v115_v35 = vpop.xlane.xlu1 %114 }
 0x33f   :  { %117 = vst.msk [vmem:[#allocation3] sm:$0xff] %vm116_vm3, %v115_v35 }
 0x344   :  { %v230_v36 = vld [vmem:[#allocation5] sm:$0xff] }
 0x345   :  { %277 = vlog2.f32 %v230_v36 }
 0x346   :  { %v234_v41 = vld [vmem:[#allocation3] sm:$0xff] }
 0x352   :  { %v278_v37 = vpop.eup %277 }
 0x353   :  { %v232_v38 = vmul.f32 0.6931472, %v278_v37 }
 0x355   :  { %v233_v40 = vadd.f32 %v232_v38, %v229_v39 }
 0x357   :  { %v235_v42 = vsub.f32 %v233_v40, %v234_v41 }
 0x359   :  { %236 = vst.msk [vmem:[%s357_s5] sm:$0xff] %vm116_vm3, %v235_v42 }

</bundles_post_ra>
